<compile_context>
chip_gen: v6e
topology: v6e:2x2x1
jax: 0.10.0
libtpu: 0.0.40
codegen_flags: <defaults>
</compile_context>

<pallas_src>
import functools

import jax
import jax.numpy as jnp
import numpy as np
from jax import lax
from jax.experimental import pallas as pl
from jax.experimental.pallas import tpu as pltpu


# ----------------------------------------------------------------------------
# Chip-aware VMEM / tile budgets
# ----------------------------------------------------------------------------
def _vmem_budget():
    """Returns (vmem_limit_bytes, input_tile_budget_bytes)."""
    try:
        cap = getattr(pltpu.get_tpu_info(), "vmem_capacity_bytes",
                      64 * 1024 * 1024)
    except Exception:  # pragma: no cover - conservative fallback off-TPU
        cap = 64 * 1024 * 1024
    # Scoped limit: half of physical VMEM, never above 64 MiB.
    #   v5e/v6e (128 MiB) -> 64 MiB scoped, 16 MiB input double-buffer budget
    #   v7x    ( 64 MiB) -> 32 MiB scoped,  8 MiB input double-buffer budget
    vmem_limit = min(cap // 2, 64 * 1024 * 1024)
    tile_budget = vmem_limit // 4
    return vmem_limit, tile_budget


# ----------------------------------------------------------------------------
# Pallas kernel: K-tiled Gram accumulation for ONE input  (B, D) -> (B, B)
# ----------------------------------------------------------------------------
def _gram_kernel(x_ref, g_ref, *, d_real, tk, mask_tail):
    k = pl.program_id(0)

    @pl.when(k == 0)
    def _init():
        g_ref[...] = jnp.zeros_like(g_ref)

    x = x_ref[...]                                     # (B, tk), input dtype
    if mask_tail:
        # Ragged feature width: zero the lanes past D on the partial last
        # tile (boundary-block contents past the array end are undefined).
        lane = lax.broadcasted_iota(jnp.int32, x.shape, 1) + k * tk
        x = jnp.where(lane < d_real, x, jnp.zeros_like(x))

    # Contract the last dims directly (no transpose); accumulate in f32 in the
    # resident output block.  Expected regime is HBM-bandwidth bound, so the
    # extra VPU mask ops above are hidden under the DMA.
    dn = (((1,), (1,)), ((), ()))
    g_ref[...] += lax.dot_general(x, x, dn, preferred_element_type=jnp.float32)


def _gram_matrix(x, tk=None):
    """f32 Gram matrix x @ x.T via a K-tiled Pallas reduction. x: (B, D)."""
    B, D = x.shape
    itemsize = jnp.dtype(x.dtype).itemsize
    vmem_limit, tile_budget = _vmem_budget()

    if D <= 128:
        # Single full-width block (block dim == array dim is always legal).
        tk = D
    else:
        if tk is None:
            # Keep 1 input x 2 pipeline buffers inside the tile budget.
            tk = tile_budget // (2 * B * itemsize)
        tk = min(tk, D)
        tk = max(128, (tk // 128) * 128)               # lane-dense K tile

    nk = pl.cdiv(D, tk)
    mask_tail = (D > 128) and (D % tk != 0)            # partial last tile

    kernel = functools.partial(_gram_kernel, d_real=D, tk=tk,
                               mask_tail=mask_tail)
    return pl.pallas_call(
        kernel,
        out_shape=jax.ShapeDtypeStruct((B, B), jnp.float32),
        grid_spec=pltpu.PrefetchScalarGridSpec(
            num_scalar_prefetch=0,
            grid=(nk,),
            in_specs=[pl.BlockSpec((B, tk), lambda k: (0, k))],
            out_specs=pl.BlockSpec((B, B), lambda k: (0, 0)),
        ),
        compiler_params=pltpu.CompilerParams(
            dimension_semantics=("arbitrary",),        # K axis is a reduction
            vmem_limit_bytes=vmem_limit,
        ),
    )(x)


# ----------------------------------------------------------------------------
# Finalize in plain JAX (O(B^2), negligible): normalized distance matrices,
# min-union, gap mass.
# ----------------------------------------------------------------------------
def _rtd_finalize(gram_a, gram_b, q=1.0):
    def norm_dist(g):
        b = g.shape[0]
        sq = jnp.diagonal(g)                           # squared norms
        d2 = sq[:, None] + sq[None, :] - 2.0 * g
        d = jnp.sqrt(jnp.maximum(d2, 0.0))
        d = d * (1.0 - jnp.eye(b, dtype=d.dtype))      # exact zero diagonal
        return d / (jnp.max(d) + 1e-12)                # exact division

    da = norm_dist(gram_a)
    db = norm_dist(gram_b)
    rmin = jnp.minimum(da, db)                         # "union" distances
    ga = jnp.maximum(da - rmin, 0.0)
    gb = jnp.maximum(db - rmin, 0.0)
    if q == 2.0:
        ga, gb = ga * ga, gb * gb
    elif q != 1.0:
        ga = jnp.where(ga > 0.0, jnp.power(ga, q), 0.0)
        gb = jnp.where(gb > 0.0, jnp.power(gb, q), 0.0)
    # Symmetric with zero diagonal: 0.5 * full sum == upper-triangle sum.
    return 0.5 * jnp.sum(ga + gb)


def rtd_pair_loss(xa, xb, q=1.0, tk=None):
    """Scalar RTD-style loss for one pair of flattened activations (B, D*)."""
    assert xa.shape[0] == xb.shape[0], "batch dims must match"
    ga = _gram_matrix(xa, tk=tk)
    gb = _gram_matrix(xb, tk=tk)
    return _rtd_finalize(ga, gb, q=q)


# ----------------------------------------------------------------------------
# Pure-JAX reference (independent implementation of the same math)
# ----------------------------------------------------------------------------
def _rtd_pair_loss_ref(xa, xb, q=1.0):
    def norm_dist(x):
        b = x.shape[0]
        sq = jnp.sum(x * x, -1, keepdims=True)
        d2 = sq + sq.T - 2.0 * (x @ x.T)
        d = jnp.sqrt(jnp.maximum(d2, 0.0))
        d = d * (1.0 - jnp.eye(b, dtype=d.dtype))
        return d / (jnp.max(d) + 1e-12)

    da, db = norm_dist(xa), norm_dist(xb)
    rmin = jnp.minimum(da, db)
    ga = jnp.maximum(da - rmin, 0.0)
    gb = jnp.maximum(db - rmin, 0.0)
    if q != 1.0:
        ga, gb = ga ** q, gb ** q
    return 0.5 * jnp.sum(ga + gb)


# ----------------------------------------------------------------------------
# RTDAttraction analogue (forward() semantics of the PyTorch module)
# ----------------------------------------------------------------------------
class RTDAttractionPallas:
    def __init__(self, pairs, coeff=1.0, maxdim=1, q=1.0,
                 stop_before=False, stop_after=False, tk=None):
        self.pairs = list(pairs)
        self.coeff = coeff
        self.q = q
        self.maxdim = maxdim  # TODO(synk): maxdim only affects the (omitted) barcode stage
        self.stop_before = stop_before
        self.stop_after = stop_after
        self.tk = tk

    def __call__(self, act):
        """act: dict name -> hooked activation array (conv NCHW or linear (B, F))."""
        loss = jnp.float32(0.0)
        for a, b in self.pairs:
            Xa = act[a]
            Xb = act[b]
            if self.stop_after:                        # hook-time .detach() analogue
                Xa = jax.lax.stop_gradient(Xa)
                Xb = jax.lax.stop_gradient(Xb)
            if self.stop_before:                       # .detach() on Xb analogue
                Xb = jax.lax.stop_gradient(Xb)
            Xa = Xa.reshape(Xa.shape[0], -1)
            Xb = Xb.reshape(Xb.shape[0], -1)
            loss = loss + rtd_pair_loss(Xa, Xb, q=self.q, tk=self.tk)
        return self.coeff * loss


if __name__ == "__main__":
    key = jax.random.PRNGKey(0)
    k_x, k_enc, k_dec = jax.random.split(key, 3)

    # Small synthetic "network": two hooked layers producing the activations
    # that RTDAttraction compares.  Deterministic weights from PRNGKey(0).
    B = 8
    x = jax.random.normal(k_x, (B, 32), jnp.float32)
    W_enc = 0.1 * jax.random.normal(k_enc, (32, 4 * 16 * 16), jnp.float32)
    W_dec = 0.1 * jax.random.normal(k_dec, (32, 32), jnp.float32)

    act = {
        "enc": (x @ W_enc).reshape(B, 4, 16, 16),      # conv-style NCHW activation
        "dec": x @ W_dec,                              # linear activation (B, 32)
    }

    model = RTDAttractionPallas(pairs=[("enc", "dec")], coeff=1.0, maxdim=1, q=1.0)
    loss = jax.block_until_ready(model(act))

    # Reference check (independent plain-JAX math; exact division, zero diag).
    Xa = act["enc"].reshape(B, -1)
    Xb = act["dec"].reshape(B, -1)
    ref = _rtd_pair_loss_ref(Xa, Xb, q=1.0)
    np.testing.assert_allclose(float(loss), float(ref), rtol=2e-3, atol=1e-3)

    # Exercise the multi-step K-tiled accumulation path (4 K tiles on the
    # 1024-wide activation; the 32-wide one stays a single full block).
    loss_tiled = jax.block_until_ready(rtd_pair_loss(Xa, Xb, q=1.0, tk=256))
    np.testing.assert_allclose(float(loss_tiled), float(ref), rtol=2e-3, atol=1e-3)

    # Ragged feature widths: exercise the in-kernel tail mask (D=300, tk=128,
    # partial last tile) and the narrow full-block path (D=20) -- no host pad.
    Xc = Xa[:, :300]
    Xd = Xb[:, :20]
    loss_ragged = jax.block_until_ready(rtd_pair_loss(Xc, Xd, q=1.0, tk=128))
    ref_ragged = _rtd_pair_loss_ref(Xc, Xd, q=1.0)
    np.testing.assert_allclose(float(loss_ragged), float(ref_ragged),
                               rtol=2e-3, atol=1e-3)

    print("KERNEL_OK")
</pallas_src>

<mosaic_0001>
module attributes {stable_mosaic.version = 11 : i64} {
  func.func @_gram_kernel(%arg0: i32, %arg1: memref<8x1024xf32, #tpu.memory_space<vmem>>, %arg2: memref<8x8xf32, #tpu.memory_space<vmem>>) attributes {dimension_semantics = [#tpu.dimension_semantics<arbitrary>], iteration_bounds = array<i64: 1>, scalar_prefetch = 0 : i64, scratch_operands = 0 : i64, tpu.core_type = #tpu.core_type<tc>, window_params = [{transform_indices = @transform_0, window_bounds = array<i64: 8, 1024>}, {pipeline_mode = #tpu.pipeline_mode<synchronous>, transform_indices = @transform_1, window_bounds = array<i64: 8, 8>}]} {
    %c0_i32 = arith.constant 0 : i32
    %0 = arith.cmpi eq, %arg0, %c0_i32 : i32
    %1 = arith.extui %0 : i1 to i32
    %c0_i32_0 = arith.constant 0 : i32
    %2 = arith.cmpi ne, %1, %c0_i32_0 : i32
    scf.if %2 {
      %cst_6 = arith.constant 0.000000e+00 : f32
      %8 = vector.broadcast %cst_6 : f32 to vector<8x8xf32>
      %c0_7 = arith.constant 0 : index
      %c0_8 = arith.constant 0 : index
      %9 = vector.load %arg2[%c0_7, %c0_8] : memref<8x8xf32, #tpu.memory_space<vmem>>, vector<8x8xf32>
      tpu.vector_store %arg2[%c0_7, %c0_8], %8 {strides = array<i32>} : memref<8x8xf32, #tpu.memory_space<vmem>>, vector<8x8xf32>,
    } else {
    }
    %c0 = arith.constant 0 : index
    %c0_1 = arith.constant 0 : index
    %3 = vector.load %arg1[%c0, %c0_1] : memref<8x1024xf32, #tpu.memory_space<vmem>>, vector<8x1024xf32>
    %c0_2 = arith.constant 0 : index
    %c0_3 = arith.constant 0 : index
    %4 = vector.load %arg2[%c0_2, %c0_3] : memref<8x8xf32, #tpu.memory_space<vmem>>, vector<8x8xf32>
    %cst = arith.constant dense<0.000000e+00> : vector<8x8xf32>
    %5 = tpu.matmul %3, %3, %cst {dimension_numbers = #tpu.dot_dimension_numbers<[1], [1], [0], [0], [0, 0, 1, 0], [], []>} : vector<8x1024xf32>, vector<8x1024xf32>, vector<8x8xf32> -> vector<8x8xf32>
    %6 = arith.addf %4, %5 : vector<8x8xf32>
    %c0_4 = arith.constant 0 : index
    %c0_5 = arith.constant 0 : index
    %7 = vector.load %arg2[%c0_4, %c0_5] : memref<8x8xf32, #tpu.memory_space<vmem>>, vector<8x8xf32>
    tpu.vector_store %arg2[%c0_4, %c0_5], %6 {strides = array<i32>} : memref<8x8xf32, #tpu.memory_space<vmem>>, vector<8x8xf32>,
    return
  }
  func.func @transform_0(%arg0: i32) -> (i32, i32) {
    %c0_i32 = arith.constant 0 : i32
    %c0_i32_0 = arith.constant 0 : i32
    return %c0_i32, %arg0 : i32, i32
  }
  func.func @transform_1(%arg0: i32) -> (i32, i32) {
    %c0_i32 = arith.constant 0 : i32
    %c0_i32_0 = arith.constant 0 : i32
    %c0_i32_1 = arith.constant 0 : i32
    return %c0_i32, %c0_i32_0 : i32, i32
  }
}

</mosaic_0001>

<bundles_post_ra>
// kernel: tpu_custom_call.1
= control target key start
LH: loop header
LB: loop body
LE: loop exit
PB: predicated region body
PF: predicated region fallthrough
CT: control target
= control target key end

     0   :  { %6 = vsyncpa [#allocation3], 0  ;;  %s402_s0 = inlined_call_operand.hbm [shape: f32[8,1024], index: 0, kind: input, shape index: {}]   ;;  %s403_s1 = inlined_call_operand.hbm [shape: f32[8,8], index: 1, kind: output, shape index: {}]  }
   0x1   :  { %7 = vsyncpa [#allocation4], 0  ;;  %s381_s6 = smov [#allocation2]  }
   0x2   :  { %s14_s7 = sshll.u32 %s381_s6, 4  ;;  %s15_s7 = int_to_ptr.vmem [resolvable:$true] %s14_s7 }
   0x3   :  { %s345_s8 = scalar_lea.vmem %s15_s7, 1024  ;;  %p350_p1 = scmp.lt.s32.totalorder %s15_s7, %s15_s7 }
   0x4   :  { %p346_p0 = scmp.ne.s32.totalorder %s15_s7, %s345_s8  ;;  %p351_p2 = scmp.lt.s32.totalorder %s345_s8, %s345_s8 }
   0x6   :  { %p352_p3 = por %p351_p2, %p350_p1 }
   0x8   :  { %p353_p4 = pnand %p352_p3, %p346_p0 }
   0xa   :  { %356 = shalt.err (!%p353_p4)
}
   0xb   :  { %17 = dma.hbm_to_vmem [thread:$0]  %s402_s0, 1024, %s15_s7, [#allocation3]  }
   0xc   :  { %377 = dma.done.wait [#allocation3], 1024  }
   0xd   :  { %378 = vsyncadd [#allocation3], 4294966272  ;;  %v28_v0 = vld [vmem:[#allocation2 + $0x8] sm:$0xff]  ;;  %v27_v1 = vld [vmem:[#allocation2] sm:$0xff]  ;;  %vm25_vm0 = vcmask 64512   ;;  %v382_v8 = vmov 0.0  }
   0xe   :  { %v30_v2 = vld [vmem:[#allocation2 + $0x18] sm:$0xff]  ;;  %66 = vmatprep.subr.mxu0 %v28_v0  ;;  %v29_v3 = vld [vmem:[#allocation2 + $0x10] sm:$0xff]  ;;  %v32_v4 = vld [vmem:[#allocation2 + $0x28] sm:$0xff]  ;;  %100 = vmatprep.mubr.f32.mxu0 %v28_v0  ;;  %26 = vst.msk [vmem:[#allocation5] sm:$0xff] %vm25_vm0, %v382_v8  ;;  %s383_s0 = smov [#allocation5]  }
   0xf   :  { %136 = vmatprep.subr.mxu1 %v30_v2  ;;  %67 = vmatpush1.xpose.msra.mxu0 %v27_v1  ;;  %v34_v5 = vld [vmem:[#allocation2 + $0x38] sm:$0xff]  ;;  %v31_v6 = vld [vmem:[#allocation2 + $0x20] sm:$0xff]  ;;  %v33_v7 = vld [vmem:[#allocation2 + $0x30] sm:$0xff]  ;;  %s325_s11 = sshll.u32 %s383_s0, 4  ;;  %s326_s11 = int_to_ptr.vmem [resolvable:$true] %s325_s11 }
  0x10   :  { %137 = vmatpush1.xpose.msra.mxu1 %v29_v3  ;;  %170 = vmatprep.mubr.f32.mxu1 %v30_v2  ;;  %s357_s12 = scalar_lea.vmem %s326_s11, 128  ;;  %p362_p6 = scmp.lt.s32.totalorder %s326_s11, %s326_s11 }
  0x11   :  { %206 = vmatprep.subr.mxu0 %v32_v4  ;;  %276 = vmatprep.subr.mxu1 %v34_v5  ;;  %p358_p5 = scmp.ne.s32.totalorder %s326_s11, %s357_s12  ;;  %p363_p7 = scmp.lt.s32.totalorder %s357_s12, %s357_s12 }
  0x12   :  { %101 = vmatmul.mubr.f32.vlgmr.msra.gmra.mxu0 %v27_v1 }
  0x13   :  { %171 = vmatmul.mubr.f32.vlgmr.msra.gmra.mxu1 %v29_v3  ;;  %207 = vmatpush1.xpose.msra.mxu0 %v31_v6  ;;  %p364_p8 = por %p363_p7, %p362_p6 }
  0x14   :  { %277 = vmatpush1.xpose.msra.mxu1 %v33_v7  ;;  %240 = vmatprep.mubr.f32.mxu0 %v32_v4 }
  0x15   :  { %310 = vmatprep.mubr.f32.mxu1 %v34_v5  ;;  %v35_v17 = vld [vmem:[#allocation5] sm:$0xff]  ;;  %p365_p9 = pnand %p364_p8, %p358_p5 }
  0x16   :  { %241 = vmatmul.mubr.f32.vlgmr.msra.gmra.mxu0 %v31_v6 }
  0x17   :  { %311 = vmatmul.mubr.f32.vlgmr.msra.gmra.mxu1 %v33_v7 }
  0xd2   :  { %v102_v9 = vpop.f32.mrf.mxu0 }
  0xd3   :  { %v172_v10 = vpop.f32.mrf.mxu1 }
  0xd4   :  { %v104_v11 = vpop.f32.mrf.mxu0  ;;  %v173_v13 = vadd.f32 %v172_v10, %v102_v9 }
  0xd5   :  { %v174_v12 = vpop.f32.mrf.mxu1 }
  0xd6   :  { %v242_v14 = vpop.f32.mrf.mxu0 }
  0xd7   :  { %v312_v15 = vpop.f32.mrf.mxu1  ;;  %v243_v16 = vadd.f32 %v242_v14, %v173_v13 }
  0xd8   :  { %v244_v18 = vpop.f32.mrf.mxu0 }
  0xd9   :  { %v314_v19 = vpop.f32.mrf.mxu1  ;;  %v313_v20 = vadd.f32 %v312_v15, %v243_v16 }
  0xdb   :  { %v316_v21 = vadd.f32 %v313_v20, %v35_v17 }
  0xdd   :  { %318 = vst.msk [vmem:[#allocation5] sm:$0xff] %vm25_vm0, %v316_v21 }
  0xde   :  { %368 = shalt.err (!%p365_p9)
}
  0xdf   :  { %328 = dma.vmem_to_hbm [thread:$0]  %s326_s11, 128, %s403_s1, [#allocation4]  }
  0xe0   :  { %379 = dma.done.wait [#allocation4], 128  }
  0xe1   :  { %380 = vsyncadd [#allocation4], 4294967168 }
  0xe2   :  { %332 = vsyncpa [#allocation3], 1 }
  0xe3   :  { %333 = vsyncpa [#allocation4], 1 }

</bundles_post_ra>
